<compile_context>
chip_gen: v6e
topology: v6e:2x2x1
jax: 0.10.0
libtpu: 0.0.40
codegen_flags: <defaults>
</compile_context>

<pallas_src>
import math
import functools

import jax
import jax.numpy as jnp
from jax import lax
from jax.experimental import pallas as pl
from jax.experimental.pallas import tpu as pltpu


def _round_up(x, m):
    return ((x + m - 1) // m) * m


def _largest_divisor_leq(n, cap):
    cap = int(max(1, min(cap, n)))
    for d in range(cap, 0, -1):
        if n % d == 0:
            return d
    return 1


# ---------------------------------------------------------------------------
# Fused kernel: input projection + serial recurrence + output projection.
# ---------------------------------------------------------------------------
def fused_dornn_kernel(x_ref, wxh_ref, whh_ref, who_ref, wxo_ref, bh_ref, bo_ref,
                       z_ref, hfin_ref, hcarry_ref, hchunk_ref,
                       *, chunk, batch, unroll, mxu_dtype):
    c = pl.program_id(0)

    @pl.when(c == 0)
    def _():
        # hidden_state is None in the reference -> h_0 = zeros(B, H)
        hcarry_ref[...] = jnp.zeros_like(hcarry_ref)

    cast = (lambda a: a.astype(mxu_dtype)) if mxu_dtype is not None else (lambda a: a)

    # --- Prologue: input projection for the whole chunk (one big MXU matmul).
    #     Result G lives only in the reused VMEM scratch, never in HBM.
    hchunk_ref[...] = (
        jnp.dot(cast(x_ref[...]), cast(wxh_ref[...]),
                preferred_element_type=jnp.float32)
        + bh_ref[...]
    )

    whh = cast(whh_ref[...])  # (Hp, Hp), loaded once per chunk

    # --- Serial recurrence: h carried in registers; per-step hidden overwrites
    #     the G slot in the scratch (becomes H_chunk for the epilogue).
    def step(t, h):
        off = pl.multiple_of(t * batch, 8)
        g_t = hchunk_ref[pl.ds(off, batch), :]
        h_new = jnp.tanh(
            jnp.dot(cast(h), whh, preferred_element_type=jnp.float32) + g_t
        )
        hchunk_ref[pl.ds(off, batch), :] = h_new
        return h_new

    h_fin = lax.fori_loop(0, chunk, step, hcarry_ref[...], unroll=unroll)
    hcarry_ref[...] = h_fin                     # once per chunk (not per step)
    hfin_ref[...] = h_fin.astype(hfin_ref.dtype)  # cheap; final writeback wins

    # --- Epilogue: output projection for the whole chunk, bulk lane-dense store.
    z = (
        jnp.dot(cast(hchunk_ref[...]), cast(who_ref[...]),
                preferred_element_type=jnp.float32)
        + jnp.dot(cast(x_ref[...]), cast(wxo_ref[...]),
                  preferred_element_type=jnp.float32)
        + bo_ref[...]
    )
    z_ref[...] = z.astype(z_ref.dtype)


def dornn_forward(x, params, *, time_chunk=None, vmem_budget_bytes=24 << 20,
                  mxu_dtype=None):
    """x: (T, B, I) float32. Returns (outputs (T, B, O), final_hidden (B, H))."""
    T, B, I = x.shape
    whh, wxh, bh = params["h_h_w"], params["x_h_w"], params["b_h"]
    who, wxo, bo = params["h_o_w"], params["x_o_w"], params["b_o"]
    H = whh.shape[0]
    O = who.shape[1]

    # ---- TPU-friendly padding: lane (128) on H/O, sublane (8) on B. ----------
    # Zero-padding is value-preserving: padded hidden columns stay exactly 0
    # (tanh(0)=0), padded batch rows are sliced off at the end.
    Bp = _round_up(B, 8)
    Hp = _round_up(H, 128)
    Op = _round_up(O, 128)

    def pad2(a, rows, cols):
        return jnp.pad(a, ((0, rows - a.shape[0]), (0, cols - a.shape[1])))

    xp = jnp.pad(x, ((0, 0), (0, Bp - B), (0, 0)))
    x_flat = xp.reshape(T * Bp, I)            # flatten in the wrapper, not in-kernel
    wxh_p = pad2(wxh, I, Hp)
    whh_p = pad2(whh, Hp, Hp)
    who_p = pad2(who, Hp, Op)
    wxo_p = pad2(wxo, I, Op)
    bh_p = pad2(bh, 1, Hp)
    bo_p = pad2(bo, 1, Op)

    # ---- Derive time chunk against a conservative VMEM budget. ---------------
    bpe = 4
    fixed = bpe * (
        2 * (I * Hp + Hp * Hp + Hp * Op + I * Op + Hp + Op)  # weights/biases (dbl-buf)
        + 2 * Bp * Hp                                        # final-hidden out block
        + Bp * Hp                                            # h carry scratch
    )
    per_step = bpe * Bp * (2 * I + 2 * Op + Hp)  # x blk x2, z blk x2, hchunk x1
    avail = max(vmem_budget_bytes - fixed, per_step)
    tc_cap = max(1, avail // per_step)
    tc_req = 256 if time_chunk is None else time_chunk  # soft cap keeps pipelining
    tc = _largest_divisor_leq(T, min(tc_req, tc_cap, T))
    unroll = min(tc, 8)

    grid = (T // tc,)
    z_flat, h_final_pad = pl.pallas_call(
        functools.partial(fused_dornn_kernel, chunk=tc, batch=Bp,
                          unroll=unroll, mxu_dtype=mxu_dtype),
        grid_spec=pltpu.PrefetchScalarGridSpec(
            num_scalar_prefetch=0,
            grid=grid,
            in_specs=[
                pl.BlockSpec((tc * Bp, I), lambda c: (c, 0)),   # X chunk (streamed)
                pl.BlockSpec((I, Hp), lambda c: (0, 0)),        # W_xh (resident)
                pl.BlockSpec((Hp, Hp), lambda c: (0, 0)),       # W_hh (resident)
                pl.BlockSpec((Hp, Op), lambda c: (0, 0)),       # W_ho (resident)
                pl.BlockSpec((I, Op), lambda c: (0, 0)),        # W_xo (resident)
                pl.BlockSpec((1, Hp), lambda c: (0, 0)),        # b_h
                pl.BlockSpec((1, Op), lambda c: (0, 0)),        # b_o
            ],
            out_specs=[
                pl.BlockSpec((tc * Bp, Op), lambda c: (c, 0)),  # Z chunk (streamed)
                pl.BlockSpec((Bp, Hp), lambda c: (0, 0)),       # final hidden
            ],
            scratch_shapes=[
                pltpu.VMEM((Bp, Hp), jnp.float32),       # h carry across chunks
                pltpu.VMEM((tc * Bp, Hp), jnp.float32),  # reused G / H_chunk buffer
            ],
        ),
        out_shape=(
            jax.ShapeDtypeStruct((T * Bp, Op), x.dtype),
            jax.ShapeDtypeStruct((Bp, Hp), x.dtype),
        ),
        compiler_params=pltpu.CompilerParams(
            dimension_semantics=("arbitrary",),
            vmem_limit_bytes=32 << 20,
        ),
    )(x_flat, wxh_p, whh_p, who_p, wxo_p, bh_p, bo_p)

    z = z_flat.reshape(T, Bp, Op)[:, :B, :O]
    h_final = h_final_pad[:B, :H]
    return z, h_final


def init_params(key, input_size, hidden_size, output_size):
    """Matches DORNNCell_Z.__init__: uniform(-stdv, stdv) weights, zero biases,
    stdv = 1/sqrt(hidden_size). Biases are pre-combined (b_h = h_h_b + x_h_b, etc.)."""
    stdv = 1.0 / math.sqrt(hidden_size)
    k1, k2, k3, k4 = jax.random.split(key, 4)
    u = lambda k, s: jax.random.uniform(k, s, jnp.float32, -stdv, stdv)
    return {
        "h_h_w": u(k1, (hidden_size, hidden_size)),
        "x_h_w": u(k2, (input_size, hidden_size)),
        "h_o_w": u(k3, (hidden_size, output_size)),
        "x_o_w": u(k4, (input_size, output_size)),
        "b_h": jnp.zeros((1, hidden_size), jnp.float32),
        "b_o": jnp.zeros((1, output_size), jnp.float32),
    }


def dornn_reference(x, params):
    """Plain-JAX reference of the same recurrence for a sanity check."""
    T, B, I = x.shape
    H = params["h_h_w"].shape[0]
    h = jnp.zeros((B, H), x.dtype)
    outs = []
    for t in range(T):
        xt = x[t]
        h = jnp.tanh(h @ params["h_h_w"] + xt @ params["x_h_w"] + params["b_h"])
        z = h @ params["h_o_w"] + xt @ params["x_o_w"] + params["b_o"]
        outs.append(z)
    return jnp.stack(outs, 0), h


if __name__ == "__main__":
    # Small shapes consistent with the module's forward: (time, batch, input)
    T, B, I, H, O = 8, 2, 4, 32, 4
    key = jax.random.PRNGKey(0)
    kx, kp = jax.random.split(key)
    x = jax.random.normal(kx, (T, B, I), jnp.float32)
    params = init_params(kp, I, H, O)

    fwd = jax.jit(dornn_forward)
    z, h_final = fwd(x, params)
    z = jax.block_until_ready(z)
    h_final = jax.block_until_ready(h_final)

    z_ref, h_ref = dornn_reference(x, params)
    assert jnp.allclose(z, z_ref, atol=1e-5, rtol=1e-5), "output mismatch"
    assert jnp.allclose(h_final, h_ref, atol=1e-5, rtol=1e-5), "hidden mismatch"

    print("KERNEL_OK")
</pallas_src>

<mosaic_0001>
module attributes {stable_mosaic.version = 11 : i64} {
  func.func @fused_dornn_kernel(%arg0: i32, %arg1: memref<64x4xf32, #tpu.memory_space<vmem>>, %arg2: memref<4x128xf32, #tpu.memory_space<vmem>>, %arg3: memref<128x128xf32, #tpu.memory_space<vmem>>, %arg4: memref<128x128xf32, #tpu.memory_space<vmem>>, %arg5: memref<4x128xf32, #tpu.memory_space<vmem>>, %arg6: memref<1x128xf32, #tpu.memory_space<vmem>>, %arg7: memref<1x128xf32, #tpu.memory_space<vmem>>, %arg8: memref<64x128xf32, #tpu.memory_space<vmem>>, %arg9: memref<8x128xf32, #tpu.memory_space<vmem>>, %arg10: memref<8x128xf32, #tpu.memory_space<vmem>>, %arg11: memref<64x128xf32, #tpu.memory_space<vmem>>) attributes {dimension_semantics = [#tpu.dimension_semantics<arbitrary>], iteration_bounds = array<i64: 1>, scalar_prefetch = 0 : i64, scratch_operands = 2 : i64, tpu.core_type = #tpu.core_type<tc>, window_params = [{transform_indices = @transform_0, window_bounds = array<i64: 64, 4>}, {pipeline_mode = #tpu.pipeline_mode<synchronous>, transform_indices = @transform_1, window_bounds = array<i64: 4, 128>}, {pipeline_mode = #tpu.pipeline_mode<synchronous>, transform_indices = @transform_2, window_bounds = array<i64: 128, 128>}, {pipeline_mode = #tpu.pipeline_mode<synchronous>, transform_indices = @transform_3, window_bounds = array<i64: 128, 128>}, {pipeline_mode = #tpu.pipeline_mode<synchronous>, transform_indices = @transform_4, window_bounds = array<i64: 4, 128>}, {pipeline_mode = #tpu.pipeline_mode<synchronous>, transform_indices = @transform_5, window_bounds = array<i64: 1, 128>}, {pipeline_mode = #tpu.pipeline_mode<synchronous>, transform_indices = @transform_6, window_bounds = array<i64: 1, 128>}, {transform_indices = @transform_7, window_bounds = array<i64: 64, 128>}, {pipeline_mode = #tpu.pipeline_mode<synchronous>, transform_indices = @transform_8, window_bounds = array<i64: 8, 128>}]} {
    %c0_i32 = arith.constant 0 : i32
    %0 = arith.cmpi eq, %arg0, %c0_i32 : i32
    %1 = arith.extui %0 : i1 to i32
    %c0_i32_0 = arith.constant 0 : i32
    %2 = arith.cmpi ne, %1, %c0_i32_0 : i32
    scf.if %2 {
      %cst_63 = arith.constant 0.000000e+00 : f32
      %97 = vector.broadcast %cst_63 : f32 to vector<8x128xf32>
      %c0_64 = arith.constant 0 : index
      %c0_65 = arith.constant 0 : index
      %98 = vector.load %arg10[%c0_64, %c0_65] : memref<8x128xf32, #tpu.memory_space<vmem>>, vector<8x128xf32>
      tpu.vector_store %arg10[%c0_64, %c0_65], %97 {strides = array<i32>} : memref<8x128xf32, #tpu.memory_space<vmem>>, vector<8x128xf32>,
    } else {
    }
    %c0 = arith.constant 0 : index
    %c0_1 = arith.constant 0 : index
    %3 = vector.load %arg1[%c0, %c0_1] : memref<64x4xf32, #tpu.memory_space<vmem>>, vector<64x4xf32>
    %c0_2 = arith.constant 0 : index
    %c0_3 = arith.constant 0 : index
    %4 = vector.load %arg2[%c0_2, %c0_3] : memref<4x128xf32, #tpu.memory_space<vmem>>, vector<4x128xf32>
    %cst = arith.constant dense<0.000000e+00> : vector<64x128xf32>
    %5 = tpu.matmul %3, %4, %cst {dimension_numbers = #tpu.dot_dimension_numbers<[1], [0], [0], [1], [0, 0, 1, 1], [], []>} : vector<64x4xf32>, vector<4x128xf32>, vector<64x128xf32> -> vector<64x128xf32>
    %c0_4 = arith.constant 0 : index
    %c0_5 = arith.constant 0 : index
    %6 = vector.load %arg6[%c0_4, %c0_5] : memref<1x128xf32, #tpu.memory_space<vmem>>, vector<1x128xf32>
    %7 = vector.broadcast %6 : vector<1x128xf32> to vector<64x128xf32>
    %8 = arith.addf %5, %7 : vector<64x128xf32>
    %c0_6 = arith.constant 0 : index
    %c0_7 = arith.constant 0 : index
    %9 = vector.load %arg11[%c0_6, %c0_7] : memref<64x128xf32, #tpu.memory_space<vmem>>, vector<64x128xf32>
    tpu.vector_store %arg11[%c0_6, %c0_7], %8 {strides = array<i32>} : memref<64x128xf32, #tpu.memory_space<vmem>>, vector<64x128xf32>,
    %c0_8 = arith.constant 0 : index
    %c0_9 = arith.constant 0 : index
    %10 = vector.load %arg3[%c0_8, %c0_9] : memref<128x128xf32, #tpu.memory_space<vmem>>, vector<128x128xf32>
    %c0_10 = arith.constant 0 : index
    %c0_11 = arith.constant 0 : index
    %11 = vector.load %arg10[%c0_10, %c0_11] : memref<8x128xf32, #tpu.memory_space<vmem>>, vector<8x128xf32>
    %c0_i32_12 = arith.constant 0 : i32
    %c8_i32 = arith.constant 8 : i32
    %12 = arith.muli %c0_i32_12, %c8_i32 : i32
    %13 = tpu.assume_multiple %12, 8 : i32
    %14 = arith.index_cast %13 : i32 to index
    %c0_13 = arith.constant 0 : index
    %15 = vector.load %arg11[%14, %c0_13] : memref<64x128xf32, #tpu.memory_space<vmem>>, vector<8x128xf32>
    %cst_14 = arith.constant dense<0.000000e+00> : vector<8x128xf32>
    %16 = tpu.matmul %11, %10, %cst_14 {dimension_numbers = #tpu.dot_dimension_numbers<[1], [0], [0], [1], [0, 0, 1, 1], [], []>} : vector<8x128xf32>, vector<128x128xf32>, vector<8x128xf32> -> vector<8x128xf32>
    %17 = arith.addf %16, %15 : vector<8x128xf32>
    %18 = math.tanh %17 : vector<8x128xf32>
    %19 = arith.index_cast %13 : i32 to index
    %c0_15 = arith.constant 0 : index
    %20 = vector.load %arg11[%19, %c0_15] : memref<64x128xf32, #tpu.memory_space<vmem>>, vector<8x128xf32>
    tpu.vector_store %arg11[%19, %c0_15], %18 {strides = array<i32>} : memref<64x128xf32, #tpu.memory_space<vmem>>, vector<8x128xf32>,
    %c1_i32 = arith.constant 1 : i32
    %c8_i32_16 = arith.constant 8 : i32
    %21 = arith.muli %c1_i32, %c8_i32_16 : i32
    %22 = tpu.assume_multiple %21, 8 : i32
    %23 = arith.index_cast %22 : i32 to index
    %c0_17 = arith.constant 0 : index
    %24 = vector.load %arg11[%23, %c0_17] : memref<64x128xf32, #tpu.memory_space<vmem>>, vector<8x128xf32>
    %cst_18 = arith.constant dense<0.000000e+00> : vector<8x128xf32>
    %25 = tpu.matmul %18, %10, %cst_18 {dimension_numbers = #tpu.dot_dimension_numbers<[1], [0], [0], [1], [0, 0, 1, 1], [], []>} : vector<8x128xf32>, vector<128x128xf32>, vector<8x128xf32> -> vector<8x128xf32>
    %26 = arith.addf %25, %24 : vector<8x128xf32>
    %27 = math.tanh %26 : vector<8x128xf32>
    %28 = arith.index_cast %22 : i32 to index
    %c0_19 = arith.constant 0 : index
    %29 = vector.load %arg11[%28, %c0_19] : memref<64x128xf32, #tpu.memory_space<vmem>>, vector<8x128xf32>
    tpu.vector_store %arg11[%28, %c0_19], %27 {strides = array<i32>} : memref<64x128xf32, #tpu.memory_space<vmem>>, vector<8x128xf32>,
    %c2_i32 = arith.constant 2 : i32
    %c8_i32_20 = arith.constant 8 : i32
    %30 = arith.muli %c2_i32, %c8_i32_20 : i32
    %31 = tpu.assume_multiple %30, 8 : i32
    %32 = arith.index_cast %31 : i32 to index
    %c0_21 = arith.constant 0 : index
    %33 = vector.load %arg11[%32, %c0_21] : memref<64x128xf32, #tpu.memory_space<vmem>>, vector<8x128xf32>
    %cst_22 = arith.constant dense<0.000000e+00> : vector<8x128xf32>
    %34 = tpu.matmul %27, %10, %cst_22 {dimension_numbers = #tpu.dot_dimension_numbers<[1], [0], [0], [1], [0, 0, 1, 1], [], []>} : vector<8x128xf32>, vector<128x128xf32>, vector<8x128xf32> -> vector<8x128xf32>
    %35 = arith.addf %34, %33 : vector<8x128xf32>
    %36 = math.tanh %35 : vector<8x128xf32>
    %37 = arith.index_cast %31 : i32 to index
    %c0_23 = arith.constant 0 : index
    %38 = vector.load %arg11[%37, %c0_23] : memref<64x128xf32, #tpu.memory_space<vmem>>, vector<8x128xf32>
    tpu.vector_store %arg11[%37, %c0_23], %36 {strides = array<i32>} : memref<64x128xf32, #tpu.memory_space<vmem>>, vector<8x128xf32>,
    %c3_i32 = arith.constant 3 : i32
    %c8_i32_24 = arith.constant 8 : i32
    %39 = arith.muli %c3_i32, %c8_i32_24 : i32
    %40 = tpu.assume_multiple %39, 8 : i32
    %41 = arith.index_cast %40 : i32 to index
    %c0_25 = arith.constant 0 : index
    %42 = vector.load %arg11[%41, %c0_25] : memref<64x128xf32, #tpu.memory_space<vmem>>, vector<8x128xf32>
    %cst_26 = arith.constant dense<0.000000e+00> : vector<8x128xf32>
    %43 = tpu.matmul %36, %10, %cst_26 {dimension_numbers = #tpu.dot_dimension_numbers<[1], [0], [0], [1], [0, 0, 1, 1], [], []>} : vector<8x128xf32>, vector<128x128xf32>, vector<8x128xf32> -> vector<8x128xf32>
    %44 = arith.addf %43, %42 : vector<8x128xf32>
    %45 = math.tanh %44 : vector<8x128xf32>
    %46 = arith.index_cast %40 : i32 to index
    %c0_27 = arith.constant 0 : index
    %47 = vector.load %arg11[%46, %c0_27] : memref<64x128xf32, #tpu.memory_space<vmem>>, vector<8x128xf32>
    tpu.vector_store %arg11[%46, %c0_27], %45 {strides = array<i32>} : memref<64x128xf32, #tpu.memory_space<vmem>>, vector<8x128xf32>,
    %c4_i32 = arith.constant 4 : i32
    %c8_i32_28 = arith.constant 8 : i32
    %48 = arith.muli %c4_i32, %c8_i32_28 : i32
    %49 = tpu.assume_multiple %48, 8 : i32
    %50 = arith.index_cast %49 : i32 to index
    %c0_29 = arith.constant 0 : index
    %51 = vector.load %arg11[%50, %c0_29] : memref<64x128xf32, #tpu.memory_space<vmem>>, vector<8x128xf32>
    %cst_30 = arith.constant dense<0.000000e+00> : vector<8x128xf32>
    %52 = tpu.matmul %45, %10, %cst_30 {dimension_numbers = #tpu.dot_dimension_numbers<[1], [0], [0], [1], [0, 0, 1, 1], [], []>} : vector<8x128xf32>, vector<128x128xf32>, vector<8x128xf32> -> vector<8x128xf32>
    %53 = arith.addf %52, %51 : vector<8x128xf32>
    %54 = math.tanh %53 : vector<8x128xf32>
    %55 = arith.index_cast %49 : i32 to index
    %c0_31 = arith.constant 0 : index
    %56 = vector.load %arg11[%55, %c0_31] : memref<64x128xf32, #tpu.memory_space<vmem>>, vector<8x128xf32>
    tpu.vector_store %arg11[%55, %c0_31], %54 {strides = array<i32>} : memref<64x128xf32, #tpu.memory_space<vmem>>, vector<8x128xf32>,
    %c5_i32 = arith.constant 5 : i32
    %c8_i32_32 = arith.constant 8 : i32
    %57 = arith.muli %c5_i32, %c8_i32_32 : i32
    %58 = tpu.assume_multiple %57, 8 : i32
    %59 = arith.index_cast %58 : i32 to index
    %c0_33 = arith.constant 0 : index
    %60 = vector.load %arg11[%59, %c0_33] : memref<64x128xf32, #tpu.memory_space<vmem>>, vector<8x128xf32>
    %cst_34 = arith.constant dense<0.000000e+00> : vector<8x128xf32>
    %61 = tpu.matmul %54, %10, %cst_34 {dimension_numbers = #tpu.dot_dimension_numbers<[1], [0], [0], [1], [0, 0, 1, 1], [], []>} : vector<8x128xf32>, vector<128x128xf32>, vector<8x128xf32> -> vector<8x128xf32>
    %62 = arith.addf %61, %60 : vector<8x128xf32>
    %63 = math.tanh %62 : vector<8x128xf32>
    %64 = arith.index_cast %58 : i32 to index
    %c0_35 = arith.constant 0 : index
    %65 = vector.load %arg11[%64, %c0_35] : memref<64x128xf32, #tpu.memory_space<vmem>>, vector<8x128xf32>
    tpu.vector_store %arg11[%64, %c0_35], %63 {strides = array<i32>} : memref<64x128xf32, #tpu.memory_space<vmem>>, vector<8x128xf32>,
    %c6_i32 = arith.constant 6 : i32
    %c8_i32_36 = arith.constant 8 : i32
    %66 = arith.muli %c6_i32, %c8_i32_36 : i32
    %67 = tpu.assume_multiple %66, 8 : i32
    %68 = arith.index_cast %67 : i32 to index
    %c0_37 = arith.constant 0 : index
    %69 = vector.load %arg11[%68, %c0_37] : memref<64x128xf32, #tpu.memory_space<vmem>>, vector<8x128xf32>
    %cst_38 = arith.constant dense<0.000000e+00> : vector<8x128xf32>
    %70 = tpu.matmul %63, %10, %cst_38 {dimension_numbers = #tpu.dot_dimension_numbers<[1], [0], [0], [1], [0, 0, 1, 1], [], []>} : vector<8x128xf32>, vector<128x128xf32>, vector<8x128xf32> -> vector<8x128xf32>
    %71 = arith.addf %70, %69 : vector<8x128xf32>
    %72 = math.tanh %71 : vector<8x128xf32>
    %73 = arith.index_cast %67 : i32 to index
    %c0_39 = arith.constant 0 : index
    %74 = vector.load %arg11[%73, %c0_39] : memref<64x128xf32, #tpu.memory_space<vmem>>, vector<8x128xf32>
    tpu.vector_store %arg11[%73, %c0_39], %72 {strides = array<i32>} : memref<64x128xf32, #tpu.memory_space<vmem>>, vector<8x128xf32>,
    %c7_i32 = arith.constant 7 : i32
    %c8_i32_40 = arith.constant 8 : i32
    %75 = arith.muli %c7_i32, %c8_i32_40 : i32
    %76 = tpu.assume_multiple %75, 8 : i32
    %77 = arith.index_cast %76 : i32 to index
    %c0_41 = arith.constant 0 : index
    %78 = vector.load %arg11[%77, %c0_41] : memref<64x128xf32, #tpu.memory_space<vmem>>, vector<8x128xf32>
    %cst_42 = arith.constant dense<0.000000e+00> : vector<8x128xf32>
    %79 = tpu.matmul %72, %10, %cst_42 {dimension_numbers = #tpu.dot_dimension_numbers<[1], [0], [0], [1], [0, 0, 1, 1], [], []>} : vector<8x128xf32>, vector<128x128xf32>, vector<8x128xf32> -> vector<8x128xf32>
    %80 = arith.addf %79, %78 : vector<8x128xf32>
    %81 = math.tanh %80 : vector<8x128xf32>
    %82 = arith.index_cast %76 : i32 to index
    %c0_43 = arith.constant 0 : index
    %83 = vector.load %arg11[%82, %c0_43] : memref<64x128xf32, #tpu.memory_space<vmem>>, vector<8x128xf32>
    tpu.vector_store %arg11[%82, %c0_43], %81 {strides = array<i32>} : memref<64x128xf32, #tpu.memory_space<vmem>>, vector<8x128xf32>,
    %c8_i32_44 = arith.constant 8 : i32
    %c0_45 = arith.constant 0 : index
    %c0_46 = arith.constant 0 : index
    %84 = vector.load %arg10[%c0_45, %c0_46] : memref<8x128xf32, #tpu.memory_space<vmem>>, vector<8x128xf32>
    tpu.vector_store %arg10[%c0_45, %c0_46], %81 {strides = array<i32>} : memref<8x128xf32, #tpu.memory_space<vmem>>, vector<8x128xf32>,
    %c0_47 = arith.constant 0 : index
    %c0_48 = arith.constant 0 : index
    %85 = vector.load %arg9[%c0_47, %c0_48] : memref<8x128xf32, #tpu.memory_space<vmem>>, vector<8x128xf32>
    tpu.vector_store %arg9[%c0_47, %c0_48], %81 {strides = array<i32>} : memref<8x128xf32, #tpu.memory_space<vmem>>, vector<8x128xf32>,
    %c0_49 = arith.constant 0 : index
    %c0_50 = arith.constant 0 : index
    %86 = vector.load %arg11[%c0_49, %c0_50] : memref<64x128xf32, #tpu.memory_space<vmem>>, vector<64x128xf32>
    %c0_51 = arith.constant 0 : index
    %c0_52 = arith.constant 0 : index
    %87 = vector.load %arg4[%c0_51, %c0_52] : memref<128x128xf32, #tpu.memory_space<vmem>>, vector<128x128xf32>
    %cst_53 = arith.constant dense<0.000000e+00> : vector<64x128xf32>
    %88 = tpu.matmul %86, %87, %cst_53 {dimension_numbers = #tpu.dot_dimension_numbers<[1], [0], [0], [1], [0, 0, 1, 1], [], []>} : vector<64x128xf32>, vector<128x128xf32>, vector<64x128xf32> -> vector<64x128xf32>
    %c0_54 = arith.constant 0 : index
    %c0_55 = arith.constant 0 : index
    %89 = vector.load %arg1[%c0_54, %c0_55] : memref<64x4xf32, #tpu.memory_space<vmem>>, vector<64x4xf32>
    %c0_56 = arith.constant 0 : index
    %c0_57 = arith.constant 0 : index
    %90 = vector.load %arg5[%c0_56, %c0_57] : memref<4x128xf32, #tpu.memory_space<vmem>>, vector<4x128xf32>
    %cst_58 = arith.constant dense<0.000000e+00> : vector<64x128xf32>
    %91 = tpu.matmul %89, %90, %cst_58 {dimension_numbers = #tpu.dot_dimension_numbers<[1], [0], [0], [1], [0, 0, 1, 1], [], []>} : vector<64x4xf32>, vector<4x128xf32>, vector<64x128xf32> -> vector<64x128xf32>
    %92 = arith.addf %88, %91 : vector<64x128xf32>
    %c0_59 = arith.constant 0 : index
    %c0_60 = arith.constant 0 : index
    %93 = vector.load %arg7[%c0_59, %c0_60] : memref<1x128xf32, #tpu.memory_space<vmem>>, vector<1x128xf32>
    %94 = vector.broadcast %93 : vector<1x128xf32> to vector<64x128xf32>
    %95 = arith.addf %92, %94 : vector<64x128xf32>
    %c0_61 = arith.constant 0 : index
    %c0_62 = arith.constant 0 : index
    %96 = vector.load %arg8[%c0_61, %c0_62] : memref<64x128xf32, #tpu.memory_space<vmem>>, vector<64x128xf32>
    tpu.vector_store %arg8[%c0_61, %c0_62], %95 {strides = array<i32>} : memref<64x128xf32, #tpu.memory_space<vmem>>, vector<64x128xf32>,
    return
  }
  func.func @transform_0(%arg0: i32) -> (i32, i32) {
    %c0_i32 = arith.constant 0 : i32
    %c0_i32_0 = arith.constant 0 : i32
    return %arg0, %c0_i32 : i32, i32
  }
  func.func @transform_1(%arg0: i32) -> (i32, i32) {
    %c0_i32 = arith.constant 0 : i32
    %c0_i32_0 = arith.constant 0 : i32
    %c0_i32_1 = arith.constant 0 : i32
    return %c0_i32, %c0_i32_0 : i32, i32
  }
  func.func @transform_2(%arg0: i32) -> (i32, i32) {
    %c0_i32 = arith.constant 0 : i32
    %c0_i32_0 = arith.constant 0 : i32
    %c0_i32_1 = arith.constant 0 : i32
    return %c0_i32, %c0_i32_0 : i32, i32
  }
  func.func @transform_3(%arg0: i32) -> (i32, i32) {
    %c0_i32 = arith.constant 0 : i32
    %c0_i32_0 = arith.constant 0 : i32
    %c0_i32_1 = arith.constant 0 : i32
    return %c0_i32, %c0_i32_0 : i32, i32
  }
  func.func @transform_4(%arg0: i32) -> (i32, i32) {
    %c0_i32 = arith.constant 0 : i32
    %c0_i32_0 = arith.constant 0 : i32
    %c0_i32_1 = arith.constant 0 : i32
    return %c0_i32, %c0_i32_0 : i32, i32
  }
  func.func @transform_5(%arg0: i32) -> (i32, i32) {
    %c0_i32 = arith.constant 0 : i32
    %c0_i32_0 = arith.constant 0 : i32
    %c0_i32_1 = arith.constant 0 : i32
    return %c0_i32, %c0_i32_0 : i32, i32
  }
  func.func @transform_6(%arg0: i32) -> (i32, i32) {
    %c0_i32 = arith.constant 0 : i32
    %c0_i32_0 = arith.constant 0 : i32
    %c0_i32_1 = arith.constant 0 : i32
    return %c0_i32, %c0_i32_0 : i32, i32
  }
  func.func @transform_7(%arg0: i32) -> (i32, i32) {
    %c0_i32 = arith.constant 0 : i32
    %c0_i32_0 = arith.constant 0 : i32
    return %arg0, %c0_i32 : i32, i32
  }
  func.func @transform_8(%arg0: i32) -> (i32, i32) {
    %c0_i32 = arith.constant 0 : i32
    %c0_i32_0 = arith.constant 0 : i32
    %c0_i32_1 = arith.constant 0 : i32
    return %c0_i32, %c0_i32_0 : i32, i32
  }
}

</mosaic_0001>

<bundles_post_ra>
// kernel: dornn_forward.1
= control target key start
LH: loop header
LB: loop body
LE: loop exit
PB: predicated region body
PF: predicated region fallthrough
CT: control target
= control target key end

     0   :  { %vm74_vm0 = vcmask 1043456   ;;  %vm49_vm1 = vcmask 31744   ;;  %v1702_v3 = vmov 0.0   ;;  %vm1703_vm2 = vmmov 0   ;;  %s2307_s1 = inlined_call_operand.vmem [shape: f32[4,128], index: 1, kind: input, shape index: {}]   ;;  %s2308_s0 = inlined_call_operand.vmem [shape: f32[64,4], index: 0, kind: input, shape index: {}]   ;;  %s2309_s2 = inlined_call_operand.vmem [shape: f32[128,128], index: 2, kind: input, shape index: {}]   ;;  %s2310_s5 = inlined_call_operand.vmem [shape: f32[1,128], index: 5, kind: input, shape index: {}]   ;;  %s2311_s4 = inlined_call_operand.vmem [shape: f32[4,128], index: 4, kind: input, shape index: {}]   ;;  %s2312_s3 = inlined_call_operand.vmem [shape: f32[128,128], index: 3, kind: input, shape index: {}]   ;;  %s2313_s8 = inlined_call_operand.vmem [shape: f32[8,128], index: 8, kind: output, shape index: {1}]   ;;  %s2314_s6 = inlined_call_operand.vmem [shape: f32[1,128], index: 6, kind: input, shape index: {}]   ;;  %s2315_s7 = inlined_call_operand.vmem [shape: f32[64,128], index: 7, kind: output, shape index: {0}]  }
   0x1   :  { %v41_v0 = vld [vmem:[%s2307_s1] sm:$0xf]  ;;  %v1760_v2 = vld [vmem:[%s2308_s0 + $0x8] sm:$0xff]  ;;  %1349 = vmatprep.subr.mxu0 %v1702_v3  ;;  %1381 = vmatprep.mubr.msk.f32.mxu0 %vm1703_vm2, %v1702_v3  ;;  %v1771_v4 = vld [vmem:[%s2309_s2 + $0x78] sm:$0xff] }
   0x2   :  { %v1755_v1 = vld [vmem:[%s2308_s0] sm:$0xff]  ;;  %1300 = vmatprep.subr.msk.mxu1 %vm74_vm0, %v41_v0  ;;  %1350 = vmatpush3.msra.mxu0 %v1771_v4  ;;  %v1781_v5 = vld [vmem:[%s2309_s2 + $0x70] sm:$0xff]  ;;  %v1794_v7 = vld [vmem:[%s2308_s0 + $0x18] sm:$0xff] }
   0x3   :  { %1302 = vmatprep.mubr.msk.f32.mxu1 %vm49_vm1, %v1755_v1  ;;  %1301 = vmatpush3.msk.msra.mxu1 %vm74_vm0, %v41_v0  ;;  %v1786_v6 = vld [vmem:[%s2308_s0 + $0x10] sm:$0xff]  ;;  %v1800_v8 = vld [vmem:[%s2309_s2 + $0x68] sm:$0xff]  ;;  %v1805_v9 = vld [vmem:[%s2308_s0 + $0x20] sm:$0xff] }
   0x4   :  { %1303 = vmatmul.mubr.msk.f32.vlgmr.msra.gmra.mxu1 %vm49_vm1, %v1760_v2  ;;  %1314 = vmatprep.subr.mxu1 %v1702_v3  ;;  %v1814_v10 = vld [vmem:[%s2309_s2 + $0x60] sm:$0xff]  ;;  %v1824_v11 = vld [vmem:[%s2308_s0 + $0x28] sm:$0xff]  ;;  %v1830_v12 = vld [vmem:[%s2309_s2 + $0x58] sm:$0xff] }
   0x5   :  { %1315 = vmatpush3.msra.mxu1 %v1771_v4  ;;  %1305 = vmatprep.mubr.msk.f32.mxu1 %vm49_vm1, %v1786_v6  ;;  %v1835_v13 = vld [vmem:[%s2308_s0 + $0x30] sm:$0xff]  ;;  %v1854_v15 = vld [vmem:[%s2308_s0 + $0x38] sm:$0xff]  ;;  %v1860_v16 = vld [vmem:[%s2309_s2 + $0x48] sm:$0xff] }
   0x6   :  { %1316 = vmatprep.subr.mxu1 %v1702_v3  ;;  %1351 = vmatprep.subr.mxu0 %v1702_v3  ;;  %v1844_v14 = vld [vmem:[%s2309_s2 + $0x50] sm:$0xff]  ;;  %v1869_v17 = vld [vmem:[%s2309_s2 + $0x40] sm:$0xff]  ;;  %v1880_v18 = vld [vmem:[%s2309_s2 + $0x38] sm:$0xff] }
   0x7   :  { %1317 = vmatpush3.msra.mxu1 %v1781_v5  ;;  %1352 = vmatpush3.msra.mxu0 %v1781_v5  ;;  %v1889_v19 = vld [vmem:[%s2309_s2 + $0x30] sm:$0xff]  ;;  %v1898_v20 = vld [vmem:[%s2309_s2 + $0x28] sm:$0xff]  ;;  %v1907_v21 = vld [vmem:[%s2309_s2 + $0x20] sm:$0xff] }
   0x8   :  { %1318 = vmatprep.subr.mxu1 %v1702_v3  ;;  %1306 = vmatmul.mubr.msk.f32.gmra.mxu1 %vm49_vm1, %v1794_v7  ;;  %v1916_v22 = vld [vmem:[%s2309_s2 + $0x18] sm:$0xff]  ;;  %v1925_v23 = vld [vmem:[%s2309_s2 + $0x10] sm:$0xff]  ;;  %v1934_v24 = vld [vmem:[%s2309_s2 + $0x8] sm:$0xff] }
   0x9   :  { %1319 = vmatpush3.msra.mxu1 %v1800_v8  ;;  %1308 = vmatprep.mubr.msk.f32.mxu1 %vm49_vm1, %v1805_v9  ;;  %v1943_v25 = vld [vmem:[%s2309_s2] sm:$0xff] }
   0xa   :  { %1320 = vmatprep.subr.mxu1 %v1702_v3  ;;  %1353 = vmatprep.subr.mxu0 %v1702_v3  ;;  %v1102_v26 = vld [vmem:[%s2310_s5] ss:$0 sm:$0xff] }
   0xb   :  { %1321 = vmatpush3.msra.mxu1 %v1814_v10  ;;  %1354 = vmatpush3.msra.mxu0 %v1800_v8 }
   0xc   :  { %1322 = vmatprep.subr.mxu1 %v1702_v3  ;;  %1309 = vmatmul.mubr.msk.f32.gmra.mxu1 %vm49_vm1, %v1824_v11 }
   0xd   :  { %1323 = vmatpush3.msra.mxu1 %v1830_v12  ;;  %1311 = vmatprep.mubr.msk.f32.mxu1 %vm49_vm1, %v1835_v13 }
   0xe   :  { %1324 = vmatprep.subr.mxu1 %v1702_v3  ;;  %1355 = vmatprep.subr.mxu0 %v1702_v3 }
   0xf   :  { %1325 = vmatpush3.msra.mxu1 %v1844_v14  ;;  %1356 = vmatpush3.msra.mxu0 %v1814_v10 }
  0x10   :  { %1326 = vmatprep.subr.mxu1 %v1702_v3  ;;  %1312 = vmatmul.mubr.msk.f32.gmra.mxu1 %vm49_vm1, %v1854_v15 }
  0x11   :  { %1327 = vmatpush3.msra.mxu1 %v1860_v16  ;;  %1346 = vmatprep.mubr.msk.f32.mxu1 %vm1703_vm2, %v1702_v3 }
  0x12   :  { %1328 = vmatprep.subr.mxu1 %v1702_v3  ;;  %1357 = vmatprep.subr.mxu0 %v1702_v3 }
  0x13   :  { %1329 = vmatpush3.msra.mxu1 %v1869_v17  ;;  %1358 = vmatpush3.msra.mxu0 %v1830_v12 }
  0x14   :  { %1330 = vmatprep.subr.mxu1 %v1702_v3  ;;  %1359 = vmatprep.subr.mxu0 %v1702_v3 }
  0x15   :  { %1331 = vmatpush3.msra.mxu1 %v1880_v18  ;;  %1360 = vmatpush3.msra.mxu0 %v1844_v14 }
  0x16   :  { %1332 = vmatprep.subr.mxu1 %v1702_v3  ;;  %1361 = vmatprep.subr.mxu0 %v1702_v3 }
  0x17   :  { %1333 = vmatpush3.msra.mxu1 %v1889_v19  ;;  %1362 = vmatpush3.msra.mxu0 %v1860_v16 }
  0x18   :  { %1334 = vmatprep.subr.mxu1 %v1702_v3  ;;  %1363 = vmatprep.subr.mxu0 %v1702_v3 }
  0x19   :  { %1335 = vmatpush3.msra.mxu1 %v1898_v20  ;;  %1364 = vmatpush3.msra.mxu0 %v1869_v17 }
  0x1a   :  { %1336 = vmatprep.subr.mxu1 %v1702_v3  ;;  %1365 = vmatprep.subr.mxu0 %v1702_v3 }
  0x1b   :  { %1337 = vmatpush3.msra.mxu1 %v1907_v21  ;;  %1366 = vmatpush3.msra.mxu0 %v1880_v18 }
  0x1c   :  { %1338 = vmatprep.subr.mxu1 %v1702_v3  ;;  %1367 = vmatprep.subr.mxu0 %v1702_v3 }
  0x1d   :  { %1339 = vmatpush3.msra.mxu1 %v1916_v22  ;;  %1368 = vmatpush3.msra.mxu0 %v1889_v19 }
  0x1e   :  { %1340 = vmatprep.subr.mxu1 %v1702_v3  ;;  %1369 = vmatprep.subr.mxu0 %v1702_v3 }
  0x1f   :  { %1341 = vmatpush3.msra.mxu1 %v1925_v23  ;;  %1370 = vmatpush3.msra.mxu0 %v1898_v20 }
  0x20   :  { %1342 = vmatprep.subr.mxu1 %v1702_v3  ;;  %1371 = vmatprep.subr.mxu0 %v1702_v3 }
  0x21   :  { %1343 = vmatpush3.msra.mxu1 %v1934_v24  ;;  %1372 = vmatpush3.msra.mxu0 %v1907_v21 }
  0x22   :  { %1344 = vmatprep.subr.mxu1 %v1702_v3  ;;  %1373 = vmatprep.subr.mxu0 %v1702_v3 }
  0x23   :  { %1345 = vmatpush3.msra.mxu1 %v1943_v25  ;;  %1374 = vmatpush3.msra.mxu0 %v1916_v22 }
  0x24   :  { %1347 = vmatmul.mubr.f32.vlgmr.msra.gmra.mxu1 %v1702_v3  ;;  %1375 = vmatprep.subr.mxu0 %v1702_v3 }
  0x25   :  { %1376 = vmatpush3.msra.mxu0 %v1925_v23  ;;  %1384 = vmatprep.subr.mxu1 %v1702_v3 }
  0x26   :  { %1377 = vmatprep.subr.mxu0 %v1702_v3  ;;  %1385 = vmatpush3.msra.mxu1 %v1771_v4 }
  0x27   :  { %1378 = vmatpush3.msra.mxu0 %v1934_v24  ;;  %1386 = vmatprep.subr.mxu1 %v1702_v3 }
  0x28   :  { %1379 = vmatprep.subr.mxu0 %v1702_v3  ;;  %1387 = vmatpush3.msra.mxu1 %v1781_v5 }
  0x29   :  { %1380 = vmatpush3.msra.mxu0 %v1943_v25  ;;  %1388 = vmatprep.subr.mxu1 %v1702_v3 }
  0x2a   :  { %1389 = vmatpush3.msra.mxu1 %v1800_v8  ;;  %1416 = vmatprep.mubr.msk.f32.mxu1 %vm1703_vm2, %v1702_v3 }
  0x2b   :  { %1390 = vmatprep.subr.mxu1 %v1702_v3  ;;  %1419 = vmatprep.subr.mxu0 %v1702_v3 }
  0x2c   :  { %1391 = vmatpush3.msra.mxu1 %v1814_v10 }
  0x2d   :  { %1392 = vmatprep.subr.mxu1 %v1702_v3 }
  0x2e   :  { %1393 = vmatpush3.msra.mxu1 %v1830_v12 }
  0x2f   :  { %1394 = vmatprep.subr.mxu1 %v1702_v3 }
  0x30   :  { %1395 = vmatpush3.msra.mxu1 %v1844_v14 }
  0x31   :  { %1396 = vmatprep.subr.mxu1 %v1702_v3 }
  0x32   :  { %1397 = vmatpush3.msra.mxu1 %v1860_v16 }
  0x33   :  { %1398 = vmatprep.subr.mxu1 %v1702_v3 }
  0x34   :  { %1399 = vmatpush3.msra.mxu1 %v1869_v17 }
  0x35   :  { %1400 = vmatprep.subr.mxu1 %v1702_v3 }
  0x36   :  { %1401 = vmatpush3.msra.mxu1 %v1880_v18 }
  0x37   :  { %1402 = vmatprep.subr.mxu1 %v1702_v3 }
  0x38   :  { %1403 = vmatpush3.msra.mxu1 %v1889_v19 }
  0x39   :  { %1404 = vmatprep.subr.mxu1 %v1702_v3 }
  0x3a   :  { %1405 = vmatpush3.msra.mxu1 %v1898_v20 }
  0x3b   :  { %1406 = vmatprep.subr.mxu1 %v1702_v3 }
  0x3c   :  { %1407 = vmatpush3.msra.mxu1 %v1907_v21 }
  0x3d   :  { %1408 = vmatprep.subr.mxu1 %v1702_v3 }
  0x3e   :  { %1409 = vmatpush3.msra.mxu1 %v1916_v22 }
  0x3f   :  { %1410 = vmatprep.subr.mxu1 %v1702_v3 }
  0x40   :  { %1411 = vmatpush3.msra.mxu1 %v1925_v23 }
  0x41   :  { %1412 = vmatprep.subr.mxu1 %v1702_v3 }
  0x42   :  { %1413 = vmatpush3.msra.mxu1 %v1934_v24 }
  0x43   :  { %1414 = vmatprep.subr.mxu1 %v1702_v3 }
  0x44   :  { %1415 = vmatpush3.msra.mxu1 %v1943_v25 }
  0x45   :  { %1454 = vmatprep.subr.mxu1 %v1702_v3 }
  0xc4   :  { %v1304_v27 = vpop.f32.mrf.mxu1 }
  0xc5   :  { %v150_v28 = vadd.f32 %v1304_v27, %v1102_v26 }
  0xc6   :  { %v144_v29 = vpop.f32.mrf.mxu1 }
  0xc7   :  { %v145_v42 = vadd.f32 %v1102_v26, %v144_v29 }
  0xc8   :  { %v1307_v30 = vpop.f32.mrf.mxu1 }
  0xc9   :  { %v1998_v31 = vadd.f32 %v1307_v30, %v1102_v26 }
  0xca   :  { %v154_v32 = vpop.f32.mrf.mxu1 }
  0xcb   :  { %v2000_v33 = vadd.f32 %v1102_v26, %v154_v32  ;;  %v1121_v32 = vld [vmem:[%s2314_s6] ss:$0 sm:$0xff] }
  0xcc   :  { %v1310_v34 = vpop.f32.mrf.mxu1 }
  0xcd   :  { %v2002_v35 = vadd.f32 %v1310_v34, %v1102_v26 }
  0xce   :  { %v164_v36 = vpop.f32.mrf.mxu1 }
  0xcf   :  { %v2004_v37 = vadd.f32 %v1102_v26, %v164_v36 }
  0xd0   :  { %v1313_v38 = vpop.f32.mrf.mxu1 }
  0xd1   :  { %v2006_v39 = vadd.f32 %v1313_v38, %v1102_v26 }
  0xd2   :  { %v174_v40 = vpop.f32.mrf.mxu1 }
  0xd3   :  { %v2008_v41 = vadd.f32 %v1102_v26, %v174_v40 }
  0xe4   :  { %v275_v43 = vpop.f32.mrf.mxu1 }
  0xe5   :  { %v276_v44 = vadd.f32 %v275_v43, %v145_v42 }
  0xe6   :  { %v1348_v45 = vpop.f32.mrf.mxu1 }
  0xe7   :  { %1686 = vtanh.f32 %v276_v44 }
  0xf4   :  { %v2010_v46 = vpop.eup %1686 }
  0xf5   :  { %1382 = vmatmul.mubr.f32.vlgmr.msra.gmra.mxu0 %v2010_v46 }
  0xf6   :  { %1420 = vmatpush3.msra.mxu0 %v1771_v4  ;;  %1451 = vmatprep.mubr.msk.f32.mxu0 %vm1703_vm2, %v1702_v3 }
  0xf7   :  { %1421 = vmatprep.subr.mxu0 %v1702_v3 }
  0xf8   :  { %1422 = vmatpush3.msra.mxu0 %v1781_v5 }
  0xf9   :  { %1423 = vmatprep.subr.mxu0 %v1702_v3 }
  0xfa   :  { %1424 = vmatpush3.msra.mxu0 %v1800_v8 }
  0xfb   :  { %1425 = vmatprep.subr.mxu0 %v1702_v3 }
  0xfc   :  { %1426 = vmatpush3.msra.mxu0 %v1814_v10 }
  0xfd   :  { %1427 = vmatprep.subr.mxu0 %v1702_v3 }
  0xfe   :  { %1428 = vmatpush3.msra.mxu0 %v1830_v12 }
  0xff   :  { %1429 = vmatprep.subr.mxu0 %v1702_v3 }
 0x100   :  { %1430 = vmatpush3.msra.mxu0 %v1844_v14 }
 0x101   :  { %1431 = vmatprep.subr.mxu0 %v1702_v3 }
 0x102   :  { %1432 = vmatpush3.msra.mxu0 %v1860_v16 }
 0x103   :  { %1433 = vmatprep.subr.mxu0 %v1702_v3 }
 0x104   :  { %1434 = vmatpush3.msra.mxu0 %v1869_v17 }
 0x105   :  { %1435 = vmatprep.subr.mxu0 %v1702_v3 }
 0x106   :  { %1436 = vmatpush3.msra.mxu0 %v1880_v18 }
 0x107   :  { %1437 = vmatprep.subr.mxu0 %v1702_v3 }
 0x108   :  { %1438 = vmatpush3.msra.mxu0 %v1889_v19 }
 0x109   :  { %1439 = vmatprep.subr.mxu0 %v1702_v3 }
 0x10a   :  { %1440 = vmatpush3.msra.mxu0 %v1898_v20 }
 0x10b   :  { %1441 = vmatprep.subr.mxu0 %v1702_v3 }
 0x10c   :  { %1442 = vmatpush3.msra.mxu0 %v1907_v21 }
 0x10d   :  { %1443 = vmatprep.subr.mxu0 %v1702_v3 }
 0x10e   :  { %1444 = vmatpush3.msra.mxu0 %v1916_v22 }
 0x10f   :  { %1445 = vmatprep.subr.mxu0 %v1702_v3 }
 0x110   :  { %1446 = vmatpush3.msra.mxu0 %v1925_v23 }
 0x111   :  { %1447 = vmatprep.subr.mxu0 %v1702_v3 }
 0x112   :  { %1448 = vmatpush3.msra.mxu0 %v1934_v24 }
 0x113   :  { %1449 = vmatprep.subr.mxu0 %v1702_v3 }
 0x114   :  { %1450 = vmatpush3.msra.mxu0 %v1943_v25 }
 0x115   :  { %1489 = vmatprep.subr.mxu0 %v1702_v3 }
 0x1b5   :  { %v349_v47 = vpop.f32.mrf.mxu0 }
 0x1b6   :  { %v350_v48 = vadd.f32 %v349_v47, %v150_v28 }
 0x1b7   :  { %v1383_v49 = vpop.f32.mrf.mxu0 }
 0x1b8   :  { %1688 = vtanh.f32 %v350_v48 }
 0x1c5   :  { %v2047_v50 = vpop.eup %1688 }
 0x1c6   :  { %1417 = vmatmul.mubr.f32.vlgmr.msra.gmra.mxu1 %v2047_v50 }
 0x1c7   :  { %1455 = vmatpush3.msra.mxu1 %v1771_v4  ;;  %1486 = vmatprep.mubr.msk.f32.mxu1 %vm1703_vm2, %v1702_v3 }
 0x1c8   :  { %1456 = vmatprep.subr.mxu1 %v1702_v3 }
 0x1c9   :  { %1457 = vmatpush3.msra.mxu1 %v1781_v5 }
 0x1ca   :  { %1458 = vmatprep.subr.mxu1 %v1702_v3 }
 0x1cb   :  { %1459 = vmatpush3.msra.mxu1 %v1800_v8 }
 0x1cc   :  { %1460 = vmatprep.subr.mxu1 %v1702_v3 }
 0x1cd   :  { %1461 = vmatpush3.msra.mxu1 %v1814_v10 }
 0x1ce   :  { %1462 = vmatprep.subr.mxu1 %v1702_v3 }
 0x1cf   :  { %1463 = vmatpush3.msra.mxu1 %v1830_v12 }
 0x1d0   :  { %1464 = vmatprep.subr.mxu1 %v1702_v3 }
 0x1d1   :  { %1465 = vmatpush3.msra.mxu1 %v1844_v14 }
 0x1d2   :  { %1466 = vmatprep.subr.mxu1 %v1702_v3 }
 0x1d3   :  { %1467 = vmatpush3.msra.mxu1 %v1860_v16 }
 0x1d4   :  { %1468 = vmatprep.subr.mxu1 %v1702_v3 }
 0x1d5   :  { %1469 = vmatpush3.msra.mxu1 %v1869_v17 }
 0x1d6   :  { %1470 = vmatprep.subr.mxu1 %v1702_v3 }
 0x1d7   :  { %1471 = vmatpush3.msra.mxu1 %v1880_v18 }
 0x1d8   :  { %1472 = vmatprep.subr.mxu1 %v1702_v3 }
 0x1d9   :  { %1473 = vmatpush3.msra.mxu1 %v1889_v19 }
 0x1da   :  { %1474 = vmatprep.subr.mxu1 %v1702_v3 }
 0x1db   :  { %1475 = vmatpush3.msra.mxu1 %v1898_v20 }
 0x1dc   :  { %1476 = vmatprep.subr.mxu1 %v1702_v3 }
 0x1dd   :  { %1477 = vmatpush3.msra.mxu1 %v1907_v21 }
 0x1de   :  { %1478 = vmatprep.subr.mxu1 %v1702_v3 }
 0x1df   :  { %1479 = vmatpush3.msra.mxu1 %v1916_v22 }
 0x1e0   :  { %1480 = vmatprep.subr.mxu1 %v1702_v3 }
 0x1e1   :  { %1481 = vmatpush3.msra.mxu1 %v1925_v23 }
 0x1e2   :  { %1482 = vmatprep.subr.mxu1 %v1702_v3 }
 0x1e3   :  { %1483 = vmatpush3.msra.mxu1 %v1934_v24 }
 0x1e4   :  { %1484 = vmatprep.subr.mxu1 %v1702_v3 }
 0x1e5   :  { %1485 = vmatpush3.msra.mxu1 %v1943_v25 }
 0x1e6   :  { %1524 = vmatprep.subr.mxu1 %v1702_v3 }
 0x286   :  { %v423_v51 = vpop.f32.mrf.mxu1 }
 0x287   :  { %v424_v52 = vadd.f32 %v423_v51, %v2000_v33 }
 0x288   :  { %v1418_v53 = vpop.f32.mrf.mxu1 }
 0x289   :  { %1690 = vtanh.f32 %v424_v52 }
 0x296   :  { %v2085_v54 = vpop.eup %1690 }
 0x297   :  { %1452 = vmatmul.mubr.f32.vlgmr.msra.gmra.mxu0 %v2085_v54 }
 0x298   :  { %1490 = vmatpush3.msra.mxu0 %v1771_v4  ;;  %1521 = vmatprep.mubr.msk.f32.mxu0 %vm1703_vm2, %v1702_v3 }
 0x299   :  { %1491 = vmatprep.subr.mxu0 %v1702_v3 }
 0x29a   :  { %1492 = vmatpush3.msra.mxu0 %v1781_v5 }
 0x29b   :  { %1493 = vmatprep.subr.mxu0 %v1702_v3 }
 0x29c   :  { %1494 = vmatpush3.msra.mxu0 %v1800_v8 }
 0x29d   :  { %1495 = vmatprep.subr.mxu0 %v1702_v3 }
 0x29e   :  { %1496 = vmatpush3.msra.mxu0 %v1814_v10 }
 0x29f   :  { %1497 = vmatprep.subr.mxu0 %v1702_v3 }
 0x2a0   :  { %1498 = vmatpush3.msra.mxu0 %v1830_v12 }
 0x2a1   :  { %1499 = vmatprep.subr.mxu0 %v1702_v3 }
 0x2a2   :  { %1500 = vmatpush3.msra.mxu0 %v1844_v14 }
 0x2a3   :  { %1501 = vmatprep.subr.mxu0 %v1702_v3 }
 0x2a4   :  { %1502 = vmatpush3.msra.mxu0 %v1860_v16 }
 0x2a5   :  { %1503 = vmatprep.subr.mxu0 %v1702_v3 }
 0x2a6   :  { %1504 = vmatpush3.msra.mxu0 %v1869_v17 }
 0x2a7   :  { %1505 = vmatprep.subr.mxu0 %v1702_v3 }
 0x2a8   :  { %1506 = vmatpush3.msra.mxu0 %v1880_v18 }
 0x2a9   :  { %1507 = vmatprep.subr.mxu0 %v1702_v3 }
 0x2aa   :  { %1508 = vmatpush3.msra.mxu0 %v1889_v19 }
 0x2ab   :  { %1509 = vmatprep.subr.mxu0 %v1702_v3 }
 0x2ac   :  { %1510 = vmatpush3.msra.mxu0 %v1898_v20 }
 0x2ad   :  { %1511 = vmatprep.subr.mxu0 %v1702_v3 }
 0x2ae   :  { %1512 = vmatpush3.msra.mxu0 %v1907_v21 }
 0x2af   :  { %1513 = vmatprep.subr.mxu0 %v1702_v3 }
 0x2b0   :  { %1514 = vmatpush3.msra.mxu0 %v1916_v22 }
 0x2b1   :  { %1515 = vmatprep.subr.mxu0 %v1702_v3 }
 0x2b2   :  { %1516 = vmatpush3.msra.mxu0 %v1925_v23 }
 0x2b3   :  { %1517 = vmatprep.subr.mxu0 %v1702_v3 }
 0x2b4   :  { %1518 = vmatpush3.msra.mxu0 %v1934_v24 }
 0x2b5   :  { %1519 = vmatprep.subr.mxu0 %v1702_v3 }
 0x2b6   :  { %1520 = vmatpush3.msra.mxu0 %v1943_v25 }
 0x2b7   :  { %1559 = vmatprep.subr.mxu0 %v1702_v3 }
 0x357   :  { %v497_v55 = vpop.f32.mrf.mxu0 }
 0x358   :  { %v498_v56 = vadd.f32 %v497_v55, %v1998_v31 }
 0x359   :  { %v1453_v57 = vpop.f32.mrf.mxu0 }
 0x35a   :  { %1692 = vtanh.f32 %v498_v56 }
 0x367   :  { %v2123_v58 = vpop.eup %1692 }
 0x368   :  { %1487 = vmatmul.mubr.f32.vlgmr.msra.gmra.mxu1 %v2123_v58 }
 0x369   :  { %1525 = vmatpush3.msra.mxu1 %v1771_v4  ;;  %1556 = vmatprep.mubr.msk.f32.mxu1 %vm1703_vm2, %v1702_v3 }
 0x36a   :  { %1526 = vmatprep.subr.mxu1 %v1702_v3 }
 0x36b   :  { %1527 = vmatpush3.msra.mxu1 %v1781_v5 }
 0x36c   :  { %1528 = vmatprep.subr.mxu1 %v1702_v3 }
 0x36d   :  { %1529 = vmatpush3.msra.mxu1 %v1800_v8 }
 0x36e   :  { %1530 = vmatprep.subr.mxu1 %v1702_v3 }
 0x36f   :  { %1531 = vmatpush3.msra.mxu1 %v1814_v10 }
 0x370   :  { %1532 = vmatprep.subr.mxu1 %v1702_v3 }
 0x371   :  { %1533 = vmatpush3.msra.mxu1 %v1830_v12 }
 0x372   :  { %1534 = vmatprep.subr.mxu1 %v1702_v3 }
 0x373   :  { %1535 = vmatpush3.msra.mxu1 %v1844_v14 }
 0x374   :  { %1536 = vmatprep.subr.mxu1 %v1702_v3 }
 0x375   :  { %1537 = vmatpush3.msra.mxu1 %v1860_v16 }
 0x376   :  { %1538 = vmatprep.subr.mxu1 %v1702_v3 }
 0x377   :  { %1539 = vmatpush3.msra.mxu1 %v1869_v17 }
 0x378   :  { %1540 = vmatprep.subr.mxu1 %v1702_v3 }
 0x379   :  { %1541 = vmatpush3.msra.mxu1 %v1880_v18 }
 0x37a   :  { %1542 = vmatprep.subr.mxu1 %v1702_v3 }
 0x37b   :  { %1543 = vmatpush3.msra.mxu1 %v1889_v19 }
 0x37c   :  { %1544 = vmatprep.subr.mxu1 %v1702_v3 }
 0x37d   :  { %1545 = vmatpush3.msra.mxu1 %v1898_v20 }
 0x37e   :  { %1546 = vmatprep.subr.mxu1 %v1702_v3 }
 0x37f   :  { %1547 = vmatpush3.msra.mxu1 %v1907_v21 }
 0x380   :  { %1548 = vmatprep.subr.mxu1 %v1702_v3 }
 0x381   :  { %1549 = vmatpush3.msra.mxu1 %v1916_v22 }
 0x382   :  { %1550 = vmatprep.subr.mxu1 %v1702_v3 }
 0x383   :  { %1551 = vmatpush3.msra.mxu1 %v1925_v23 }
 0x384   :  { %1552 = vmatprep.subr.mxu1 %v1702_v3 }
 0x385   :  { %1553 = vmatpush3.msra.mxu1 %v1934_v24 }
 0x386   :  { %1554 = vmatprep.subr.mxu1 %v1702_v3 }
 0x387   :  { %1555 = vmatpush3.msra.mxu1 %v1943_v25 }
 0x428   :  { %v571_v59 = vpop.f32.mrf.mxu1 }
 0x429   :  { %v572_v60 = vadd.f32 %v571_v59, %v2004_v37 }
 0x42a   :  { %v1488_v61 = vpop.f32.mrf.mxu1 }
 0x42b   :  { %1694 = vtanh.f32 %v572_v60 }
 0x438   :  { %v2160_v62 = vpop.eup %1694 }
 0x439   :  { %1522 = vmatmul.mubr.f32.vlgmr.msra.gmra.mxu0 %v2160_v62 }
 0x43a   :  { %1560 = vmatpush3.msra.mxu0 %v1771_v4  ;;  %1591 = vmatprep.mubr.msk.f32.mxu0 %vm1703_vm2, %v1702_v3 }
 0x43b   :  { %1561 = vmatprep.subr.mxu0 %v1702_v3 }
 0x43c   :  { %1562 = vmatpush3.msra.mxu0 %v1781_v5 }
 0x43d   :  { %1563 = vmatprep.subr.mxu0 %v1702_v3 }
 0x43e   :  { %1564 = vmatpush3.msra.mxu0 %v1800_v8  ;;  %v833_v8 = vld [vmem:[%s2311_s4] sm:$0xf] }
 0x43f   :  { %1565 = vmatprep.subr.mxu0 %v1702_v3  ;;  %1594 = vmatprep.subr.msk.mxu1 %vm74_vm0, %v833_v8 }
 0x440   :  { %1566 = vmatpush3.msra.mxu0 %v1814_v10  ;;  %v818_v10 = vld [vmem:[%s2312_s3 + $0x48] sm:$0xff] }
 0x441   :  { %1567 = vmatprep.subr.mxu0 %v1702_v3 }
 0x442   :  { %1568 = vmatpush3.msra.mxu0 %v1830_v12  ;;  %v816_v12 = vld [vmem:[%s2312_s3 + $0x38] sm:$0xff] }
 0x443   :  { %1569 = vmatprep.subr.mxu0 %v1702_v3 }
 0x444   :  { %1570 = vmatpush3.msra.mxu0 %v1844_v14  ;;  %v814_v14 = vld [vmem:[%s2312_s3 + $0x28] sm:$0xff] }
 0x445   :  { %1571 = vmatprep.subr.mxu0 %v1702_v3 }
 0x446   :  { %1572 = vmatpush3.msra.mxu0 %v1860_v16  ;;  %v812_v16 = vld [vmem:[%s2312_s3 + $0x18] sm:$0xff] }
 0x447   :  { %1573 = vmatprep.subr.mxu0 %v1702_v3 }
 0x448   :  { %1574 = vmatpush3.msra.mxu0 %v1869_v17  ;;  %v811_v17 = vld [vmem:[%s2312_s3 + $0x10] sm:$0xff] }
 0x449   :  { %1575 = vmatprep.subr.mxu0 %v1702_v3 }
 0x44a   :  { %1576 = vmatpush3.msra.mxu0 %v1880_v18  ;;  %v810_v18 = vld [vmem:[%s2312_s3 + $0x8] sm:$0xff] }
 0x44b   :  { %1577 = vmatprep.subr.mxu0 %v1702_v3 }
 0x44c   :  { %1578 = vmatpush3.msra.mxu0 %v1889_v19  ;;  %v809_v19 = vld [vmem:[%s2312_s3] sm:$0xff] }
 0x44d   :  { %1579 = vmatprep.subr.mxu0 %v1702_v3 }
 0x44e   :  { %1580 = vmatpush3.msra.mxu0 %v1898_v20 }
 0x44f   :  { %1581 = vmatprep.subr.mxu0 %v1702_v3 }
 0x450   :  { %1582 = vmatpush3.msra.mxu0 %v1907_v21 }
 0x451   :  { %1583 = vmatprep.subr.mxu0 %v1702_v3 }
 0x452   :  { %1584 = vmatpush3.msra.mxu0 %v1916_v22 }
 0x453   :  { %1585 = vmatprep.subr.mxu0 %v1702_v3 }
 0x454   :  { %1586 = vmatpush3.msra.mxu0 %v1925_v23 }
 0x455   :  { %1587 = vmatprep.subr.mxu0 %v1702_v3 }
 0x456   :  { %1588 = vmatpush3.msra.mxu0 %v1934_v24 }
 0x457   :  { %1589 = vmatprep.subr.mxu0 %v1702_v3  ;;  %v824_v3 = vld [vmem:[%s2312_s3 + $0x78] sm:$0xff] }
 0x458   :  { %1590 = vmatpush3.msra.mxu0 %v1943_v25 }
 0x459   :  { %1608 = vmatprep.subr.mxu0 %v824_v3 }
 0x4f9   :  { %v645_v63 = vpop.f32.mrf.mxu0 }
 0x4fa   :  { %v646_v0 = vadd.f32 %v645_v63, %v2002_v35 }
 0x4fb   :  { %v1523_v4 = vpop.f32.mrf.mxu0 }
 0x4fc   :  { %1696 = vtanh.f32 %v646_v0 }
 0x509   :  { %v2197_v5 = vpop.eup %1696 }
 0x50a   :  { %1557 = vmatmul.mubr.f32.vlgmr.msra.gmra.mxu1 %v2197_v5 }
 0x50b   :  { %1596 = vmatprep.mubr.msk.f32.mxu1 %vm49_vm1, %v1755_v1  ;;  %1595 = vmatpush3.msk.msra.mxu1 %vm74_vm0, %v833_v8  ;;  %v823_v1 = vld [vmem:[%s2312_s3 + $0x70] sm:$0xff] }
 0x50c   :  { %1652 = vmatprep.subr.mxu1 %v824_v3 }
 0x50e   :  { %1597 = vmatmul.mubr.msk.f32.vlgmr.msra.gmra.mxu1 %vm49_vm1, %v1760_v2  ;;  %v822_v2 = vld [vmem:[%s2312_s3 + $0x68] sm:$0xff] }
 0x50f   :  { %1599 = vmatprep.mubr.msk.f32.mxu1 %vm49_vm1, %v1786_v6  ;;  %1668 = vmatpush3.msra.mxu1 %v824_v3  ;;  %v821_v6 = vld [vmem:[%s2312_s3 + $0x60] sm:$0xff] }
 0x510   :  { %1653 = vmatprep.subr.mxu1 %v823_v1 }
 0x511   :  { %1669 = vmatpush3.msra.mxu1 %v823_v1 }
 0x512   :  { %1600 = vmatmul.mubr.msk.f32.gmra.mxu1 %vm49_vm1, %v1794_v7  ;;  %1654 = vmatprep.subr.mxu1 %v822_v2  ;;  %v820_v7 = vld [vmem:[%s2312_s3 + $0x58] sm:$0xff] }
 0x513   :  { %1602 = vmatprep.mubr.msk.f32.mxu1 %vm49_vm1, %v1805_v9  ;;  %1670 = vmatpush3.msra.mxu1 %v822_v2  ;;  %v819_v9 = vld [vmem:[%s2312_s3 + $0x50] sm:$0xff] }
 0x514   :  { %1655 = vmatprep.subr.mxu1 %v821_v6 }
 0x515   :  { %1671 = vmatpush3.msra.mxu1 %v821_v6 }
 0x516   :  { %1603 = vmatmul.mubr.msk.f32.gmra.mxu1 %vm49_vm1, %v1824_v11  ;;  %1656 = vmatprep.subr.mxu1 %v820_v7  ;;  %v817_v11 = vld [vmem:[%s2312_s3 + $0x40] sm:$0xff] }
 0x517   :  { %1605 = vmatprep.mubr.msk.f32.mxu1 %vm49_vm1, %v1835_v13  ;;  %1672 = vmatpush3.msra.mxu1 %v820_v7  ;;  %v815_v13 = vld [vmem:[%s2312_s3 + $0x30] sm:$0xff] }
 0x518   :  { %1657 = vmatprep.subr.mxu1 %v819_v9 }
 0x519   :  { %1673 = vmatpush3.msra.mxu1 %v819_v9 }
 0x51a   :  { %1606 = vmatmul.mubr.msk.f32.gmra.mxu1 %vm49_vm1, %v1854_v15  ;;  %1658 = vmatprep.subr.mxu1 %v818_v10  ;;  %v813_v15 = vld [vmem:[%s2312_s3 + $0x20] sm:$0xff] }
 0x51b   :  { %1674 = vmatpush3.msra.mxu1 %v818_v10 }
 0x51c   :  { %1659 = vmatprep.subr.mxu1 %v817_v11 }
 0x51d   :  { %1675 = vmatpush3.msra.mxu1 %v817_v11 }
 0x51e   :  { %1660 = vmatprep.subr.mxu1 %v816_v12 }
 0x51f   :  { %1676 = vmatpush3.msra.mxu1 %v816_v12 }
 0x520   :  { %1661 = vmatprep.subr.mxu1 %v815_v13 }
 0x521   :  { %1677 = vmatpush3.msra.mxu1 %v815_v13 }
 0x522   :  { %1662 = vmatprep.subr.mxu1 %v814_v14 }
 0x523   :  { %1678 = vmatpush3.msra.mxu1 %v814_v14 }
 0x524   :  { %1663 = vmatprep.subr.mxu1 %v813_v15 }
 0x525   :  { %1679 = vmatpush3.msra.mxu1 %v813_v15 }
 0x526   :  { %1664 = vmatprep.subr.mxu1 %v812_v16 }
 0x527   :  { %1680 = vmatpush3.msra.mxu1 %v812_v16 }
 0x528   :  { %1665 = vmatprep.subr.mxu1 %v811_v17 }
 0x529   :  { %1681 = vmatpush3.msra.mxu1 %v811_v17 }
 0x52a   :  { %1666 = vmatprep.subr.mxu1 %v810_v18 }
 0x52b   :  { %1682 = vmatpush3.msra.mxu1 %v810_v18 }
 0x52c   :  { %1667 = vmatprep.subr.mxu1 %v809_v19 }
 0x52d   :  { %1683 = vmatpush3.msra.mxu1 %v809_v19 }
 0x5ca   :  { %v719_v20 = vpop.f32.mrf.mxu1 }
 0x5cb   :  { %v720_v21 = vadd.f32 %v719_v20, %v2008_v41 }
 0x5cc   :  { %v1558_v22 = vpop.f32.mrf.mxu1 }
 0x5cd   :  { %1698 = vtanh.f32 %v720_v21 }
 0x5ce   :  { %v1598_v28 = vpop.f32.mrf.mxu1 }
 0x5d0   :  { %v927_v29 = vpop.f32.mrf.mxu1 }
 0x5d2   :  { %v1601_v30 = vpop.f32.mrf.mxu1 }
 0x5d4   :  { %v937_v33 = vpop.f32.mrf.mxu1 }
 0x5da   :  { %v1699_v23 = vpop.eup %1698 }
 0x5db   :  { %1592 = vmatmul.mubr.f32.vlgmr.msra.gmra.mxu0 %v1699_v23  ;;  %1649 = vmatprep.mubr.f32.mxu1 %v1699_v23 }
 0x5dc   :  { %1609 = vmatpush3.msra.mxu0 %v824_v3  ;;  %1640 = vmatprep.mubr.f32.mxu0 %v2010_v46 }
 0x5dd   :  { %1610 = vmatprep.subr.mxu0 %v823_v1 }
 0x5de   :  { %1611 = vmatpush3.msra.mxu0 %v823_v1 }
 0x5df   :  { %1612 = vmatprep.subr.mxu0 %v822_v2 }
 0x5e0   :  { %1613 = vmatpush3.msra.mxu0 %v822_v2 }
 0x5e1   :  { %1614 = vmatprep.subr.mxu0 %v821_v6 }
 0x5e2   :  { %1615 = vmatpush3.msra.mxu0 %v821_v6 }
 0x5e3   :  { %1616 = vmatprep.subr.mxu0 %v820_v7 }
 0x5e4   :  { %1617 = vmatpush3.msra.mxu0 %v820_v7 }
 0x5e5   :  { %1618 = vmatprep.subr.mxu0 %v819_v9 }
 0x5e6   :  { %1619 = vmatpush3.msra.mxu0 %v819_v9 }
 0x5e7   :  { %1620 = vmatprep.subr.mxu0 %v818_v10 }
 0x5e8   :  { %1621 = vmatpush3.msra.mxu0 %v818_v10 }
 0x5e9   :  { %1622 = vmatprep.subr.mxu0 %v817_v11 }
 0x5ea   :  { %1623 = vmatpush3.msra.mxu0 %v817_v11 }
 0x5eb   :  { %1624 = vmatprep.subr.mxu0 %v816_v12 }
 0x5ec   :  { %1625 = vmatpush3.msra.mxu0 %v816_v12 }
 0x5ed   :  { %1626 = vmatprep.subr.mxu0 %v815_v13 }
 0x5ee   :  { %1627 = vmatpush3.msra.mxu0 %v815_v13 }
 0x5ef   :  { %1628 = vmatprep.subr.mxu0 %v814_v14 }
 0x5f0   :  { %1629 = vmatpush3.msra.mxu0 %v814_v14 }
 0x5f1   :  { %1630 = vmatprep.subr.mxu0 %v813_v15 }
 0x5f2   :  { %1631 = vmatpush3.msra.mxu0 %v813_v15 }
 0x5f3   :  { %1632 = vmatprep.subr.mxu0 %v812_v16 }
 0x5f4   :  { %1633 = vmatpush3.msra.mxu0 %v812_v16 }
 0x5f5   :  { %1634 = vmatprep.subr.mxu0 %v811_v17 }
 0x5f6   :  { %1635 = vmatpush3.msra.mxu0 %v811_v17 }
 0x5f7   :  { %1636 = vmatprep.subr.mxu0 %v810_v18 }
 0x5f8   :  { %1637 = vmatpush3.msra.mxu0 %v810_v18 }
 0x5f9   :  { %1638 = vmatprep.subr.mxu0 %v809_v19 }
 0x5fa   :  { %1639 = vmatpush3.msra.mxu0 %v809_v19 }
 0x5fb   :  { %1641 = vmatmul.mubr.f32.vlgmr.msra.gmra.mxu0 %v2047_v50 }
 0x5fc   :  { %1643 = vmatprep.mubr.f32.mxu0 %v2085_v54 }
 0x5ff   :  { %1644 = vmatmul.mubr.f32.gmra.mxu0 %v2123_v58 }
 0x600   :  { %1646 = vmatprep.mubr.f32.mxu0 %v2160_v62 }
 0x603   :  { %1647 = vmatmul.mubr.f32.gmra.mxu0 %v2197_v5 }
 0x69b   :  { %v793_v24 = vpop.f32.mrf.mxu0 }
 0x69c   :  { %v794_v25 = vadd.f32 %v793_v24, %v2006_v39  ;;  %v1604_v39 = vpop.f32.mrf.mxu1 }
 0x69d   :  { %v1593_v26 = vpop.f32.mrf.mxu0 }
 0x69e   :  { %1700 = vtanh.f32 %v794_v25  ;;  %v947_v46 = vpop.f32.mrf.mxu1 }
 0x6a0   :  { %v1607_v53 = vpop.f32.mrf.mxu1 }
 0x6a2   :  { %v957_v54 = vpop.f32.mrf.mxu1 }
 0x6ab   :  { %v1701_v27 = vpop.eup %1700 }
 0x6ac   :  { %800 = vst [vmem:[%s2313_s8] sm:$0xff] %v1701_v27  ;;  %1650 = vmatmul.mubr.f32.vlgmr.msra.gmra.mxu1 %v1701_v27 }
 0x6bb   :  { %v1642_v31 = vpop.f32.mrf.mxu0 }
 0x6bc   :  { %v1038_v34 = vadd.f32 %v1642_v31, %v1598_v28 }
 0x6bd   :  { %v1032_v35 = vpop.f32.mrf.mxu0 }
 0x6be   :  { %v1079_v36 = vadd.f32 %v1121_v32, %v1038_v34  ;;  %v1033_v37 = vadd.f32 %v1032_v35, %v927_v29 }
 0x6bf   :  { %v1645_v38 = vpop.f32.mrf.mxu0 }
 0x6c0   :  { %1087 = vst [vmem:[%s2315_s7 + $0x8] sm:$0xff] %v1079_v36  ;;  %v1078_v40 = vadd.f32 %v1121_v32, %v1033_v37  ;;  %v1048_v41 = vadd.f32 %v1645_v38, %v1601_v30 }
 0x6c1   :  { %v1042_v42 = vpop.f32.mrf.mxu0 }
 0x6c2   :  { %1086 = vst [vmem:[%s2315_s7] sm:$0xff] %v1078_v40  ;;  %v1081_v43 = vadd.f32 %v1121_v32, %v1048_v41  ;;  %v1043_v44 = vadd.f32 %v1042_v42, %v937_v33 }
 0x6c3   :  { %v1648_v45 = vpop.f32.mrf.mxu0 }
 0x6c4   :  { %1089 = vst [vmem:[%s2315_s7 + $0x18] sm:$0xff] %v1081_v43  ;;  %v1080_v47 = vadd.f32 %v1121_v32, %v1043_v44  ;;  %v1058_v48 = vadd.f32 %v1648_v45, %v1604_v39 }
 0x6c5   :  { %v1052_v49 = vpop.f32.mrf.mxu0 }
 0x6c6   :  { %1088 = vst [vmem:[%s2315_s7 + $0x10] sm:$0xff] %v1080_v47  ;;  %v1083_v50 = vadd.f32 %v1121_v32, %v1058_v48  ;;  %v1053_v51 = vadd.f32 %v1052_v49, %v947_v46 }
 0x6c8   :  { %1091 = vst [vmem:[%s2315_s7 + $0x28] sm:$0xff] %v1083_v50  ;;  %v1082_v52 = vadd.f32 %v1121_v32, %v1053_v51 }
 0x6ca   :  { %1090 = vst [vmem:[%s2315_s7 + $0x20] sm:$0xff] %v1082_v52 }
 0x76c   :  { %v1651_v55 = vpop.f32.mrf.mxu1 }
 0x76d   :  { %v1068_v56 = vadd.f32 %v1651_v55, %v1607_v53 }
 0x76e   :  { %v1062_v57 = vpop.f32.mrf.mxu1 }
 0x76f   :  { %v1085_v58 = vadd.f32 %v1121_v32, %v1068_v56  ;;  %v1063_v59 = vadd.f32 %v1062_v57, %v957_v54 }
 0x771   :  { %1093 = vst [vmem:[%s2315_s7 + $0x38] sm:$0xff] %v1085_v58  ;;  %v1084_v60 = vadd.f32 %v1121_v32, %v1063_v59 }
 0x773   :  { %1092 = vst [vmem:[%s2315_s7 + $0x30] sm:$0xff] %v1084_v60 }

</bundles_post_ra>
